<compile_context>
chip_gen: v5e
topology: v5e:2x2
jax: 0.10.0
libtpu: 0.0.40
codegen_flags: <defaults>
</compile_context>

<pallas_src>
import functools

import jax
import jax.numpy as jnp
from jax.experimental import pallas as pl
from jax.experimental.pallas import tpu as pltpu


def _round_up(a, b):
    return (a + b - 1) // b * b


def _cdiv(a, b):
    return (a + b - 1) // b


def _vmem_capacity_bytes():
    """Best-effort physical VMEM size; conservative 64 MiB (v7x) fallback."""
    try:
        info = pltpu.get_tpu_info()
        for attr in ("vmem_capacity_bytes", "vmem_size_bytes", "vmem_bytes"):
            v = getattr(info, attr, None)
            if v:
                return int(v)
    except Exception:
        pass
    return 64 * 1024 * 1024


def _choose_th(hp128, max_th=1024):
    """Largest hidden tile (multiple of 128) with <=12.5% padding waste."""
    th = min(max_th, hp128)
    while th > 128:
        hp = _round_up(hp128, th)
        if hp - hp128 <= hp128 // 8:
            return th, hp
        th //= 2
    return 128, hp128


def prepare_ffn_params(w1, b1, w2, b2, max_th=1024):
    """One-time weight prep: pad to lane-dense 128-multiples and cast to bf16.

    Call once per parameter set (outside the per-step path).  feed_forward then
    streams these padded bf16 weights with zero per-call copies.
    """
    E, H = w1.shape
    Ep = _round_up(E, 128)
    th, Hp = _choose_th(_round_up(H, 128), max_th)

    w1_p = jnp.zeros((Ep, Hp), jnp.bfloat16).at[:E, :H].set(w1.astype(jnp.bfloat16))
    w2_p = jnp.zeros((Hp, Ep), jnp.bfloat16).at[:H, :E].set(w2.astype(jnp.bfloat16))
    b1_p = jnp.zeros((1, Hp), jnp.float32).at[0, :H].set(b1.astype(jnp.float32))
    b2_p = jnp.zeros((1, Ep), jnp.float32).at[0, :E].set(b2.astype(jnp.float32))
    return {"w1": w1_p, "b1": b1_p, "w2": w2_p, "b2": b2_p, "th": th}


def _ffn_kernel(x_ref, w1_ref, b1_ref, w2_ref, b2_ref, o_ref):
    # x_ref : (tm, Ep) f32     w1_ref: (Ep, th) bf16   b1_ref: (1, th) f32
    # w2_ref: (th, Ep) bf16    b2_ref: (1, Ep)  f32    o_ref : (tm, Ep) f32
    k = pl.program_id(1)

    # First matmul on the MXU (bf16 x bf16 -> f32 accumulate); bias+ReLU in f32.
    xb = x_ref[...].astype(jnp.bfloat16)
    h = jnp.dot(xb, w1_ref[...], preferred_element_type=jnp.float32)
    h = jnp.maximum(h + b1_ref[...], 0.0)

    # Second matmul; accumulate straight into the VMEM-resident output block.
    contrib = jnp.dot(h.astype(jnp.bfloat16), w2_ref[...],
                      preferred_element_type=jnp.float32)

    @pl.when(k == 0)
    def _():
        o_ref[...] = contrib          # no zero-init + add on the first step

    @pl.when(k > 0)
    def _():
        o_ref[...] += contrib

    @pl.when(k == pl.num_programs(1) - 1)
    def _():
        o_ref[...] += b2_ref[...]


@functools.partial(jax.jit, static_argnames=("th",))
def _ffn_forward(x, w1_p, b1_p, w2_p, b2_p, *, th):
    B, T, E = x.shape
    M = B * T
    Ep, Hp = w1_p.shape

    # ---- generation-aware tile selection (all static under jit) -------------
    vmem_cap = _vmem_capacity_bytes()
    big_vmem = vmem_cap >= 96 * 1024 * 1024        # v5e/v6e (128 MiB) vs v7x (64 MiB)
    budget = int(vmem_cap * 0.75)                  # leave compiler/internal headroom

    tm_max = 1024 if big_vmem else 384
    if M <= 32:
        tm = _round_up(M, 16)
    elif M <= 2 * tm_max:
        tm = _round_up(_cdiv(M, 2), 16)            # >=2 row tiles -> both TCs busy
    else:
        tm = tm_max
    Mp = _round_up(M, tm)

    def footprint(tm_, th_):
        return (2 * tm_ * Ep * 4                   # x tiles (f32, double-buffered)
                + 2 * Ep * th_ * 2                 # W1 tiles (bf16)
                + 2 * th_ * Ep * 2                 # W2 tiles (bf16)
                + 2 * th_ * 4 + 2 * Ep * 4         # bias tiles (f32)
                + 2 * tm_ * Ep * 4                 # output tiles (f32, acc in place)
                + tm_ * th_ * 4                    # intermediate h slab (f32)
                + tm_ * Ep * 2)                    # in-kernel bf16 cast of x

    while (footprint(tm, th) > budget and th > 128
           and (th // 2) % 128 == 0 and Hp % (th // 2) == 0):
        th //= 2
    while footprint(tm, th) > budget and tm > 64:
        tm = max(64, _round_up(tm // 2, 16))
        Mp = _round_up(M, tm)

    grid = (Mp // tm, Hp // th)          # rows parallel (first), hidden arbitrary (last)

    # ---- x: pad only when needed; stays f32 (cast to bf16 inside the kernel) -
    x2d = x.reshape(M, E)
    if Mp == M and Ep == E:
        x_p = x2d
    else:
        x_p = jnp.zeros((Mp, Ep), x2d.dtype).at[:M, :E].set(x2d)

    vmem_limit = int(min(vmem_cap - 8 * 1024 * 1024,
                         footprint(tm, th) + 8 * 1024 * 1024))
    vmem_limit = max(vmem_limit, 16 * 1024 * 1024)

    flops = 4 * Mp * Ep * Hp             # two matmuls, 2*M*N*K each
    bytes_accessed = (x_p.size * 4 + w1_p.size * 2 + w2_p.size * 2
                      + b1_p.size * 4 + b2_p.size * 4 + Mp * Ep * 4)
    cost = pl.CostEstimate(flops=flops, transcendentals=0,
                           bytes_accessed=bytes_accessed)

    out_p = pl.pallas_call(
        _ffn_kernel,
        out_shape=jax.ShapeDtypeStruct((Mp, Ep), jnp.float32),
        grid_spec=pltpu.PrefetchScalarGridSpec(
            num_scalar_prefetch=0,
            grid=grid,
            in_specs=[
                pl.BlockSpec((tm, Ep), lambda i, k: (i, 0)),   # x row tile (k-resident)
                pl.BlockSpec((Ep, th), lambda i, k: (0, k)),   # W1 column tile
                pl.BlockSpec((1, th), lambda i, k: (0, k)),    # b1 tile
                pl.BlockSpec((th, Ep), lambda i, k: (k, 0)),   # W2 row tile
                pl.BlockSpec((1, Ep), lambda i, k: (0, 0)),    # b2 (resident)
            ],
            out_specs=pl.BlockSpec((tm, Ep), lambda i, k: (i, 0)),
        ),
        compiler_params=pltpu.CompilerParams(
            dimension_semantics=("parallel", "arbitrary"),
            vmem_limit_bytes=vmem_limit),
        cost_estimate=cost,
    )(x_p, w1_p, b1_p, w2_p, b2_p)

    out = out_p if (Mp == M and Ep == E) else out_p[:M, :E]
    return out.reshape(B, T, E).astype(x.dtype)


def feed_forward(x, params):
    """x: (B, T, E) float32 -> (B, T, E) float32.  Fused MLP forward (eval mode)."""
    return _ffn_forward(x, params["w1"], params["b1"], params["w2"], params["b2"],
                        th=params["th"])


def _init_params(key, emb_size):
    """Deterministic init mimicking nn.Linear default U(-1/sqrt(fan_in), +)."""
    hidden = 4 * emb_size
    k1, k2, k3, k4 = jax.random.split(key, 4)
    bound1 = 1.0 / (emb_size ** 0.5)
    bound2 = 1.0 / (hidden ** 0.5)
    w1 = jax.random.uniform(k1, (emb_size, hidden), jnp.float32, -bound1, bound1)
    b1 = jax.random.uniform(k2, (hidden,), jnp.float32, -bound1, bound1)
    w2 = jax.random.uniform(k3, (hidden, emb_size), jnp.float32, -bound2, bound2)
    b2 = jax.random.uniform(k4, (emb_size,), jnp.float32, -bound2, bound2)
    return w1, b1, w2, b2


if __name__ == "__main__":
    key = jax.random.PRNGKey(0)
    kx, kp = jax.random.split(key)

    B, T, E = 2, 8, 32                   # batch=2, seq=8, emb=32 -> hidden=128
    x = jax.random.normal(kx, (B, T, E), dtype=jnp.float32)
    w1, b1, w2, b2 = _init_params(kp, E)

    params = prepare_ffn_params(w1, b1, w2, b2)   # one-time weight pad/cast
    y = feed_forward(x, params)
    y = jax.block_until_ready(y)
    assert y.shape == (B, T, E)

    # Reference mirroring the kernel's bf16 operand casts (f32 accumulation).
    xb = x.reshape(-1, E).astype(jnp.bfloat16).astype(jnp.float32)
    w1b = w1.astype(jnp.bfloat16).astype(jnp.float32)
    w2b = w2.astype(jnp.bfloat16).astype(jnp.float32)
    h = jnp.maximum(xb @ w1b + b1, 0.0)
    ref_bf16 = (h.astype(jnp.bfloat16).astype(jnp.float32) @ w2b + b2).reshape(B, T, E)
    assert jnp.allclose(y, ref_bf16, atol=1e-2, rtol=1e-2), "mismatch vs bf16 reference"

    # Loose check against the pure-f32 reference (dropout identity in eval mode).
    ref_f32 = (jnp.maximum(x.reshape(-1, E) @ w1 + b1, 0.0) @ w2 + b2).reshape(B, T, E)
    assert jnp.allclose(y, ref_f32, atol=3e-2, rtol=3e-2), "mismatch vs f32 reference"

    print("KERNEL_OK")
</pallas_src>

<mosaic_0001>
module attributes {stable_mosaic.version = 11 : i64} {
  func.func @_ffn_kernel(%arg0: i32, %arg1: i32, %arg2: memref<16x128xf32, #tpu.memory_space<vmem>>, %arg3: memref<128x128xbf16, #tpu.memory_space<vmem>>, %arg4: memref<1x128xf32, #tpu.memory_space<vmem>>, %arg5: memref<128x128xbf16, #tpu.memory_space<vmem>>, %arg6: memref<1x128xf32, #tpu.memory_space<vmem>>, %arg7: memref<16x128xf32, #tpu.memory_space<vmem>>) attributes {dimension_semantics = [#tpu.dimension_semantics<parallel>, #tpu.dimension_semantics<arbitrary>], iteration_bounds = array<i64: 1, 1>, scalar_prefetch = 0 : i64, scratch_operands = 0 : i64, tpu.core_type = #tpu.core_type<tc>, window_params = [{transform_indices = @transform_0, window_bounds = array<i64: 16, 128>}, {transform_indices = @transform_1, window_bounds = array<i64: 128, 128>}, {transform_indices = @transform_2, window_bounds = array<i64: 1, 128>}, {transform_indices = @transform_3, window_bounds = array<i64: 128, 128>}, {pipeline_mode = #tpu.pipeline_mode<synchronous>, transform_indices = @transform_4, window_bounds = array<i64: 1, 128>}, {transform_indices = @transform_5, window_bounds = array<i64: 16, 128>}]} {
    %c0 = arith.constant 0 : index
    %c0_0 = arith.constant 0 : index
    %0 = vector.load %arg2[%c0, %c0_0] : memref<16x128xf32, #tpu.memory_space<vmem>>, vector<16x128xf32>
    %1 = arith.truncf %0 : vector<16x128xf32> to vector<16x128xbf16>
    %c0_1 = arith.constant 0 : index
    %c0_2 = arith.constant 0 : index
    %2 = vector.load %arg3[%c0_1, %c0_2] : memref<128x128xbf16, #tpu.memory_space<vmem>>, vector<128x128xbf16>
    %cst = arith.constant dense<0.000000e+00> : vector<16x128xf32>
    %3 = tpu.matmul %1, %2, %cst {dimension_numbers = #tpu.dot_dimension_numbers<[1], [0], [0], [1], [0, 0, 1, 1], [], []>} : vector<16x128xbf16>, vector<128x128xbf16>, vector<16x128xf32> -> vector<16x128xf32>
    %c0_3 = arith.constant 0 : index
    %c0_4 = arith.constant 0 : index
    %4 = vector.load %arg4[%c0_3, %c0_4] : memref<1x128xf32, #tpu.memory_space<vmem>>, vector<1x128xf32>
    %5 = vector.broadcast %4 : vector<1x128xf32> to vector<16x128xf32>
    %6 = arith.addf %3, %5 : vector<16x128xf32>
    %cst_5 = arith.constant 0.000000e+00 : f32
    %7 = vector.broadcast %cst_5 : f32 to vector<16x128xf32>
    %8 = arith.maximumf %6, %7 : vector<16x128xf32>
    %9 = arith.truncf %8 : vector<16x128xf32> to vector<16x128xbf16>
    %c0_6 = arith.constant 0 : index
    %c0_7 = arith.constant 0 : index
    %10 = vector.load %arg5[%c0_6, %c0_7] : memref<128x128xbf16, #tpu.memory_space<vmem>>, vector<128x128xbf16>
    %cst_8 = arith.constant dense<0.000000e+00> : vector<16x128xf32>
    %11 = tpu.matmul %9, %10, %cst_8 {dimension_numbers = #tpu.dot_dimension_numbers<[1], [0], [0], [1], [0, 0, 1, 1], [], []>} : vector<16x128xbf16>, vector<128x128xbf16>, vector<16x128xf32> -> vector<16x128xf32>
    %c0_i32 = arith.constant 0 : i32
    %12 = arith.cmpi eq, %arg1, %c0_i32 : i32
    %13 = arith.extui %12 : i1 to i32
    %c0_i32_9 = arith.constant 0 : i32
    %14 = arith.cmpi ne, %13, %c0_i32_9 : i32
    scf.if %14 {
      %c0_14 = arith.constant 0 : index
      %c0_15 = arith.constant 0 : index
      %21 = vector.load %arg7[%c0_14, %c0_15] : memref<16x128xf32, #tpu.memory_space<vmem>>, vector<16x128xf32>
      tpu.vector_store %arg7[%c0_14, %c0_15], %11 {strides = array<i32>} : memref<16x128xf32, #tpu.memory_space<vmem>>, vector<16x128xf32>,
    } else {
    }
    %c0_i32_10 = arith.constant 0 : i32
    %15 = arith.cmpi sgt, %arg1, %c0_i32_10 : i32
    %16 = arith.extui %15 : i1 to i32
    %c0_i32_11 = arith.constant 0 : i32
    %17 = arith.cmpi ne, %16, %c0_i32_11 : i32
    scf.if %17 {
      %c0_14 = arith.constant 0 : index
      %c0_15 = arith.constant 0 : index
      %21 = vector.load %arg7[%c0_14, %c0_15] : memref<16x128xf32, #tpu.memory_space<vmem>>, vector<16x128xf32>
      %22 = arith.addf %21, %11 : vector<16x128xf32>
      %c0_16 = arith.constant 0 : index
      %c0_17 = arith.constant 0 : index
      %23 = vector.load %arg7[%c0_16, %c0_17] : memref<16x128xf32, #tpu.memory_space<vmem>>, vector<16x128xf32>
      tpu.vector_store %arg7[%c0_16, %c0_17], %22 {strides = array<i32>} : memref<16x128xf32, #tpu.memory_space<vmem>>, vector<16x128xf32>,
    } else {
    }
    %c0_i32_12 = arith.constant 0 : i32
    %18 = arith.cmpi eq, %arg1, %c0_i32_12 : i32
    %19 = arith.extui %18 : i1 to i32
    %c0_i32_13 = arith.constant 0 : i32
    %20 = arith.cmpi ne, %19, %c0_i32_13 : i32
    scf.if %20 {
      %c0_14 = arith.constant 0 : index
      %c0_15 = arith.constant 0 : index
      %21 = vector.load %arg7[%c0_14, %c0_15] : memref<16x128xf32, #tpu.memory_space<vmem>>, vector<16x128xf32>
      %c0_16 = arith.constant 0 : index
      %c0_17 = arith.constant 0 : index
      %22 = vector.load %arg6[%c0_16, %c0_17] : memref<1x128xf32, #tpu.memory_space<vmem>>, vector<1x128xf32>
      %23 = vector.broadcast %22 : vector<1x128xf32> to vector<16x128xf32>
      %24 = arith.addf %21, %23 : vector<16x128xf32>
      %c0_18 = arith.constant 0 : index
      %c0_19 = arith.constant 0 : index
      %25 = vector.load %arg7[%c0_18, %c0_19] : memref<16x128xf32, #tpu.memory_space<vmem>>, vector<16x128xf32>
      tpu.vector_store %arg7[%c0_18, %c0_19], %24 {strides = array<i32>} : memref<16x128xf32, #tpu.memory_space<vmem>>, vector<16x128xf32>,
    } else {
    }
    return
  }
  func.func @transform_0(%arg0: i32, %arg1: i32) -> (i32, i32) {
    %c0_i32 = arith.constant 0 : i32
    %c0_i32_0 = arith.constant 0 : i32
    return %arg0, %c0_i32 : i32, i32
  }
  func.func @transform_1(%arg0: i32, %arg1: i32) -> (i32, i32) {
    %c0_i32 = arith.constant 0 : i32
    %c0_i32_0 = arith.constant 0 : i32
    return %c0_i32, %arg1 : i32, i32
  }
  func.func @transform_2(%arg0: i32, %arg1: i32) -> (i32, i32) {
    %c0_i32 = arith.constant 0 : i32
    %c0_i32_0 = arith.constant 0 : i32
    return %c0_i32, %arg1 : i32, i32
  }
  func.func @transform_3(%arg0: i32, %arg1: i32) -> (i32, i32) {
    %c0_i32 = arith.constant 0 : i32
    %c0_i32_0 = arith.constant 0 : i32
    return %arg1, %c0_i32 : i32, i32
  }
  func.func @transform_4(%arg0: i32, %arg1: i32) -> (i32, i32) {
    %c0_i32 = arith.constant 0 : i32
    %c0_i32_0 = arith.constant 0 : i32
    %c0_i32_1 = arith.constant 0 : i32
    return %c0_i32, %c0_i32_0 : i32, i32
  }
  func.func @transform_5(%arg0: i32, %arg1: i32) -> (i32, i32) {
    %c0_i32 = arith.constant 0 : i32
    %c0_i32_0 = arith.constant 0 : i32
    return %arg0, %c0_i32 : i32, i32
  }
}

</mosaic_0001>

<bundles_post_ra>
// kernel: _ffn_forward.1
= control target key start
LH: loop header
LB: loop body
LE: loop exit
PB: predicated region body
PF: predicated region fallthrough
CT: control target
= control target key end

     0   :  { %10 = vsyncpa [#allocation3], 0  ;;  %s347_s21 = smov [#allocation2]   ;;  %s348_s23 = smov 64   ;;  %s425_s0 = inlined_call_operand.vmem [shape: f32[16,128], index: 0, kind: input, shape index: {}]   ;;  %s426_s1 = inlined_call_operand.vmem [shape: bf16[128,128], index: 1, kind: input, shape index: {}]   ;;  %s427_s2 = inlined_call_operand.vmem [shape: f32[1,128], index: 2, kind: input, shape index: {}]   ;;  %s428_s3 = inlined_call_operand.hbm [shape: bf16[128,128], index: 3, kind: input, shape index: {}]   ;;  %s429_s4 = inlined_call_operand.vmem [shape: f32[1,128], index: 4, kind: input, shape index: {}]   ;;  %s430_s5 = inlined_call_operand.vmem [shape: f32[16,128], index: 5, kind: output, shape index: {}]  }
   0x1   :  { %s21_s20 = sshll.u32 %s428_s3, 4  ;;  %s23_s22 = sshll.u32 %s347_s21, 4  ;;  %s22_s20 = int_to_ptr.hbm [resolvable:$true] %s21_s20  ;;  %s24_s22 = int_to_ptr.vmem [resolvable:$true] %s23_s22 }
   0x2   :  { %s349_s24 = smov 4  }
   0x3   :  { %29 = dma.hbm_to_vmem [thread:$0]  %s22_s20, 1024, %s24_s22, [#allocation3], %s348_s23, %s348_s23, %s349_s24  }
   0x4   :  { %345 = dma.done.wait [#allocation3], 1024  }
   0x5   :  { %346 = vsyncadd [#allocation3], 4294966272  ;;  %v307_v0 = vld [vmem:[%s426_s1 + $0x38] sm:$0xff]  ;;  %v306_v1 = vld [vmem:[%s426_s1 + $0x30] sm:$0xff] }
   0x6   :  { %107 = vmatpush.bf16.msra.mxu0 %v307_v0  ;;  %v315_v2 = vld [vmem:[#allocation2 + $0x38] sm:$0xff]  ;;  %v314_v3 = vld [vmem:[#allocation2 + $0x30] sm:$0xff]  ;;  %v305_v4 = vld [vmem:[%s426_s1 + $0x28] sm:$0xff] }
   0x7   :  { %188 = vmatpush.bf16.msra.mxu1 %v315_v2  ;;  %v313_v5 = vld [vmem:[#allocation2 + $0x28] sm:$0xff]  ;;  %v304_v6 = vld [vmem:[%s426_s1 + $0x20] sm:$0xff]  ;;  %v303_v8 = vld [vmem:[%s426_s1 + $0x18] sm:$0xff] }
   0x8   :  { %v312_v7 = vld [vmem:[#allocation2 + $0x20] sm:$0xff]  ;;  %v302_v9 = vld [vmem:[%s426_s1 + $0x10] sm:$0xff]  ;;  %v301_v10 = vld [vmem:[%s426_s1 + $0x8] sm:$0xff] }
   0x9   :  { %v300_v11 = vld [vmem:[%s426_s1] sm:$0xff]  ;;  %v37_v13 = vld [vmem:[%s425_s0 + $0x8] sm:$0xff]  ;;  %v311_v15 = vld [vmem:[#allocation2 + $0x18] sm:$0xff] }
   0xa   :  { %108 = vmatpush.bf16.msra.mxu0 %v306_v1  ;;  %v36_v12 = vld [vmem:[%s425_s0] sm:$0xff]  ;;  %v310_v16 = vld [vmem:[#allocation2 + $0x10] sm:$0xff]  ;;  %v309_v17 = vld [vmem:[#allocation2 + $0x8] sm:$0xff] }
   0xb   :  { %189 = vmatpush.bf16.msra.mxu1 %v314_v3  ;;  %v38_v14 = vpack.c.bf16 %v37_v13, %v36_v12  ;;  %v308_v18 = vld [vmem:[#allocation2] sm:$0xff] }
   0xc   :  { %v319_v20 = vld [vmem:[%s427_s2] ss:$0 sm:$0xff] }
   0xd   :  { %v320_v27 = vld [vmem:[%s429_s4] ss:$0 sm:$0xff] }
   0xe   :  { %109 = vmatpush.bf16.msra.mxu0 %v305_v4 }
   0xf   :  { %190 = vmatpush.bf16.msra.mxu1 %v313_v5 }
  0x12   :  { %110 = vmatpush.bf16.msra.mxu0 %v304_v6 }
  0x13   :  { %191 = vmatpush.bf16.msra.mxu1 %v312_v7 }
  0x16   :  { %111 = vmatpush.bf16.msra.mxu0 %v303_v8 }
  0x17   :  { %192 = vmatpush.bf16.msra.mxu1 %v311_v15 }
  0x1a   :  { %112 = vmatpush.bf16.msra.mxu0 %v302_v9 }
  0x1b   :  { %193 = vmatpush.bf16.msra.mxu1 %v310_v16 }
  0x1e   :  { %113 = vmatpush.bf16.msra.mxu0 %v301_v10 }
  0x1f   :  { %194 = vmatpush.bf16.msra.mxu1 %v309_v17 }
  0x22   :  { %114 = vmatpush.bf16.msra.mxu0 %v300_v11 }
  0x23   :  { %195 = vmatpush.bf16.msra.mxu1 %v308_v18 }
  0x25   :  { %115 = vmatmul.bf16.vlgmr.msra.gmra.mxu0 %v38_v14 }
  0xa2   :  { %v116_v19 = vpop.f32.mrf.mxu0 }
  0xa3   :  { %v117_v21 = vadd.f32 %v319_v20, %v116_v19 }
  0xa5   :  { %v121_v24 = vmax.f32 %v117_v21, 0.0 }
  0xaa   :  { %v118_v22 = vpop.f32.mrf.mxu0 }
  0xab   :  { %v119_v23 = vadd.f32 %v319_v20, %v118_v22 }
  0xad   :  { %v122_v25 = vmax.f32 %v119_v23, 0.0 }
  0xaf   :  { %v123_v26 = vpack.c.bf16 %v122_v25, %v121_v24 }
  0xb1   :  { %196 = vmatmul.bf16.vlgmr.msra.gmra.mxu1 %v123_v26 }
 0x12e   :  { %v197_v28 = vpop.f32.mrf.mxu1 }
 0x12f   :  { %v227_v29 = vadd.f32 %v320_v27, %v197_v28 }
 0x131   :  { %229 = vst [vmem:[%s430_s5] sm:$0xff] %v227_v29 }
 0x136   :  { %v199_v30 = vpop.f32.mrf.mxu1 }
 0x137   :  { %v228_v31 = vadd.f32 %v320_v27, %v199_v30 }
 0x139   :  { %230 = vst [vmem:[%s430_s5 + $0x8] sm:$0xff] %v228_v31 }
 0x13a   :  { %235 = vsyncpa [#allocation3], 1 }

</bundles_post_ra>
